<compile_context>
chip_gen: v6e
topology: v6e:2x2x1
jax: 0.10.0
libtpu: 0.0.40
codegen_flags: <defaults>
</compile_context>

<pallas_src>
import jax
import jax.numpy as jnp
from jax import lax
from jax.experimental import pallas as pl
from jax.experimental.pallas import tpu as pltpu


def _round_up(x, m):
    return ((x + m - 1) // m) * m


def _make_triplet_kernel(batch_size, padded):
    """batch_size: Python int, padded: Python bool (both static, no traced captures)."""

    def kernel(sq_i_ref, sq_j_ref, lab_i_ref, lab_j_ref, idx_i_ref, idx_j_ref,
               ei_ref, ej_ref, max_out_ref, min_out_ref):
        j = pl.program_id(1)

        # Per-row-block accumulators live in the (resident-across-j) output
        # blocks; re-initialize them at the start of every j sweep.
        @pl.when(j == 0)
        def _init():
            max_out_ref[...] = jnp.full_like(max_out_ref, -jnp.inf)
            min_out_ref[...] = jnp.full_like(min_out_ref, jnp.inf)

        # Gram tile on the MXU (last-last contraction -> no in-kernel
        # transpose); native dtype in, f32 accumulation out.
        gram = lax.dot_general(
            ei_ref[...], ej_ref[...],
            dimension_numbers=(((1,), (1,)), ((), ())),
            preferred_element_type=jnp.float32)               # (TM, TN)

        # Squared distances from hoisted norms: d^2 = |ei|^2 + |ej|^2 - 2 ei.ej
        d2 = sq_i_ref[...] + sq_j_ref[...] - 2.0 * gram        # (TM, TN)

        same = lab_i_ref[...] == lab_j_ref[...]                # (TM, TN) via broadcast
        diag = idx_i_ref[...] == idx_j_ref[...]                # exact eye mask

        if padded:
            # Only compiled in when B was padded up to the tile multiple.
            row_ok = idx_i_ref[...] < batch_size               # (TM, 1)
            col_ok = idx_j_ref[...] < batch_size               # (1, TN)
            pos_mask = same & jnp.logical_not(diag) & row_ok & col_ok
            neg_mask = jnp.logical_not(same) & row_ok & col_ok
        else:
            pos_mask = same & jnp.logical_not(diag)
            neg_mask = jnp.logical_not(same)

        # sqrt is monotone -> reduce on squared distances; sqrt happens once
        # in the wrapper on two scalars.
        tile_max_pos = jnp.max(jnp.where(pos_mask, d2, -jnp.inf))
        tile_min_neg = jnp.min(jnp.where(neg_mask, d2, jnp.inf))

        max_out_ref[...] = jnp.maximum(max_out_ref[...], tile_max_pos)
        min_out_ref[...] = jnp.minimum(min_out_ref[...], tile_min_neg)

    return kernel


def triplet_loss(embeddings, labels, margin=1.0, num_hard=1,
                 block_rows=512, block_cols=512):
    """Pallas TPU implementation of TripletLoss.forward (num_hard must be 1)."""
    assert num_hard == 1, "only num_hard=1 (module default) is implemented"
    B, D = embeddings.shape
    labels = labels.astype(jnp.int32).reshape(B)

    # ---- hoisted squared norms (tiny XLA op, computed once) ----------------
    e_f32 = embeddings.astype(jnp.float32)
    sq = jnp.sum(e_f32 * e_f32, axis=1)                         # (B,)

    # ---- tile selection + padding (never a full (B,B) fallback block) ------
    if B <= min(block_rows, block_cols):
        tm = tn = _round_up(B, 8)      # single tile per axis; tn == full extent
        b_pad = tm
    else:
        if block_rows % 8 or block_cols % 128:
            raise ValueError("block_rows must be a multiple of 8 and "
                             "block_cols a multiple of 128")
        lo, hi = sorted((block_rows, block_cols))
        if hi % lo:
            raise ValueError("block_rows and block_cols must divide each other")
        tm, tn = block_rows, block_cols
        b_pad = _round_up(B, hi)

    pad = b_pad - B
    if pad:
        emb_in = jnp.pad(embeddings, ((0, pad), (0, 0)))
        sq_in = jnp.pad(sq, (0, pad))
        lab_in = jnp.pad(labels, (0, pad))     # value irrelevant: masked by idx < B
    else:
        emb_in, sq_in, lab_in = embeddings, sq, labels

    idx = jnp.arange(b_pad, dtype=jnp.int32)

    sq_col = sq_in.reshape(b_pad, 1)
    sq_row = sq_in.reshape(1, b_pad)
    lab_col = lab_in.reshape(b_pad, 1)
    lab_row = lab_in.reshape(1, b_pad)
    idx_col = idx.reshape(b_pad, 1)
    idx_row = idx.reshape(1, b_pad)

    grid = (b_pad // tm, b_pad // tn)

    out_max, out_min = pl.pallas_call(
        _make_triplet_kernel(B, padded=(pad > 0)),
        out_shape=(
            jax.ShapeDtypeStruct((grid[0], 8, 128), jnp.float32),
            jax.ShapeDtypeStruct((grid[0], 8, 128), jnp.float32),
        ),
        grid_spec=pltpu.PrefetchScalarGridSpec(
            num_scalar_prefetch=0,
            grid=grid,
            in_specs=[
                pl.BlockSpec((tm, 1), lambda i, j: (i, 0)),    # |ei|^2 column
                pl.BlockSpec((1, tn), lambda i, j: (0, j)),    # |ej|^2 row
                pl.BlockSpec((tm, 1), lambda i, j: (i, 0)),    # labels (rows)
                pl.BlockSpec((1, tn), lambda i, j: (0, j)),    # labels (cols)
                pl.BlockSpec((tm, 1), lambda i, j: (i, 0)),    # indices (rows)
                pl.BlockSpec((1, tn), lambda i, j: (0, j)),    # indices (cols)
                pl.BlockSpec((tm, D), lambda i, j: (i, 0)),    # row-tile embeddings
                pl.BlockSpec((tn, D), lambda i, j: (j, 0)),    # col-tile embeddings
            ],
            out_specs=[
                pl.BlockSpec((1, 8, 128), lambda i, j: (i, 0, 0)),  # max pos d^2
                pl.BlockSpec((1, 8, 128), lambda i, j: (i, 0, 0)),  # min neg d^2
            ],
        ),
        compiler_params=pltpu.CompilerParams(
            # Row blocks are independent -> "parallel" (uses both v7x TCs);
            # only the j axis carries the running max/min.
            dimension_semantics=("parallel", "arbitrary"),
            # Above v5e's 16 MiB / v6e-v7x's 32 MiB scoped defaults; actual
            # usage at 512x512 tiles is single-digit MiB, well under v7x's
            # 64 MiB physical VMEM.
            vmem_limit_bytes=64 * 1024 * 1024,
        ),
    )(sq_col, sq_row, lab_col, lab_row, idx_col, idx_row, emb_in, emb_in)

    # ---- tiny epilogue on a handful of scalars ------------------------------
    max_pos_d2 = jnp.max(out_max)
    min_neg_d2 = jnp.min(out_min)
    hard_pos = jnp.sqrt(jnp.maximum(max_pos_d2, 0.0))
    hard_neg = jnp.sqrt(jnp.maximum(min_neg_d2, 0.0))
    loss = jnp.maximum(hard_pos - hard_neg + margin, 0.0)

    # Validity ("k_positive == 0 or k_negative == 0 -> 0") from labels alone.
    s = jnp.sort(labels)
    pos_exists = jnp.any(s[1:] == s[:-1])          # some label appears >= twice
    neg_exists = jnp.any(labels != labels[0])      # more than one distinct label
    valid = jnp.logical_and(pos_exists, neg_exists)
    return jnp.where(valid, loss, 0.0)


def triplet_loss_ref(embeddings, labels, margin=1.0):
    """Pure-JAX reference mirroring the PyTorch forward (num_hard=1)."""
    e = embeddings.astype(jnp.float32)
    B = e.shape[0]
    sq = jnp.sum(e * e, axis=1)
    d2 = sq[:, None] + sq[None, :] - 2.0 * (e @ e.T)
    dist = jnp.sqrt(jnp.maximum(d2, 0.0))
    same = labels[:, None] == labels[None, :]
    eye = jnp.eye(B, dtype=bool)
    pos_mask = same & ~eye
    neg_mask = ~same
    hard_pos = jnp.max(jnp.where(pos_mask, dist, -jnp.inf))
    hard_neg = jnp.min(jnp.where(neg_mask, dist, jnp.inf))
    loss = jnp.maximum(hard_pos - hard_neg + margin, 0.0)
    valid = jnp.any(pos_mask) & jnp.any(neg_mask)
    return jnp.where(valid, loss, 0.0)


if __name__ == "__main__":
    key = jax.random.PRNGKey(0)
    k1, k2, k3, k4 = jax.random.split(key, 4)

    # Small case: single padded tile (B rounded up to a multiple of 8).
    B, D = 8, 32
    emb = jax.random.normal(k1, (B, D), dtype=jnp.float32)
    lab = jax.random.randint(k2, (B,), 0, 3, dtype=jnp.int32)
    out = jax.block_until_ready(triplet_loss(emb, lab, margin=1.0, num_hard=1))
    ref = jax.block_until_ready(triplet_loss_ref(emb, lab, margin=1.0))
    assert jnp.allclose(out, ref, rtol=1e-4, atol=1e-4), (out, ref)

    # Tiled + padded case: B=200 with 128x128 tiles -> pad to 256, (2,2) grid,
    # per-row-block partial outputs and the index-validity masking path.
    B2, D2 = 200, 64
    emb2 = jax.random.normal(k3, (B2, D2), dtype=jnp.float32)
    lab2 = jax.random.randint(k4, (B2,), 0, 5, dtype=jnp.int32)
    out2 = jax.block_until_ready(
        triplet_loss(emb2, lab2, margin=1.0, num_hard=1,
                     block_rows=128, block_cols=128))
    ref2 = jax.block_until_ready(triplet_loss_ref(emb2, lab2, margin=1.0))
    assert jnp.allclose(out2, ref2, rtol=1e-4, atol=1e-4), (out2, ref2)

    print("KERNEL_OK")
</pallas_src>

<mosaic_0001>
module attributes {stable_mosaic.version = 11 : i64} {
  func.func @kernel(%arg0: i32, %arg1: i32, %arg2: memref<8x1xf32, #tpu.memory_space<vmem>>, %arg3: memref<1x8xf32, #tpu.memory_space<vmem>>, %arg4: memref<8x1xi32, #tpu.memory_space<vmem>>, %arg5: memref<1x8xi32, #tpu.memory_space<vmem>>, %arg6: memref<8x1xi32, #tpu.memory_space<vmem>>, %arg7: memref<1x8xi32, #tpu.memory_space<vmem>>, %arg8: memref<8x32xf32, #tpu.memory_space<vmem>>, %arg9: memref<8x32xf32, #tpu.memory_space<vmem>>, %arg10: memref<1x8x128xf32, #tpu.memory_space<vmem>>, %arg11: memref<1x8x128xf32, #tpu.memory_space<vmem>>) attributes {dimension_semantics = [#tpu.dimension_semantics<parallel>, #tpu.dimension_semantics<arbitrary>], iteration_bounds = array<i64: 1, 1>, scalar_prefetch = 0 : i64, scratch_operands = 0 : i64, tpu.core_type = #tpu.core_type<tc>, window_params = [{transform_indices = @transform_0, window_bounds = array<i64: 8, 1>}, {transform_indices = @transform_1, window_bounds = array<i64: 1, 8>}, {transform_indices = @transform_2, window_bounds = array<i64: 8, 1>}, {transform_indices = @transform_3, window_bounds = array<i64: 1, 8>}, {transform_indices = @transform_4, window_bounds = array<i64: 8, 1>}, {transform_indices = @transform_5, window_bounds = array<i64: 1, 8>}, {transform_indices = @transform_6, window_bounds = array<i64: 8, 32>}, {transform_indices = @transform_7, window_bounds = array<i64: 8, 32>}, {transform_indices = @transform_8, window_bounds = array<i64: 1, 8, 128>}, {transform_indices = @transform_9, window_bounds = array<i64: 1, 8, 128>}]} {
    %c0_i32 = arith.constant 0 : i32
    %0 = arith.cmpi eq, %arg1, %c0_i32 : i32
    %1 = arith.extui %0 : i1 to i32
    %c0_i32_0 = arith.constant 0 : i32
    %2 = arith.cmpi ne, %1, %c0_i32_0 : i32
    scf.if %2 {
      %cst_35 = arith.constant 0xFF800000 : f32
      %47 = vector.broadcast %cst_35 : f32 to vector<1x8x128xf32>
      %c0_36 = arith.constant 0 : index
      %c0_37 = arith.constant 0 : index
      %c0_38 = arith.constant 0 : index
      %48 = vector.load %arg10[%c0_36, %c0_37, %c0_38] : memref<1x8x128xf32, #tpu.memory_space<vmem>>, vector<1x8x128xf32>
      tpu.vector_store %arg10[%c0_36, %c0_37, %c0_38], %47 {strides = array<i32>} : memref<1x8x128xf32, #tpu.memory_space<vmem>>, vector<1x8x128xf32>,
      %cst_39 = arith.constant 0x7F800000 : f32
      %49 = vector.broadcast %cst_39 : f32 to vector<1x8x128xf32>
      %c0_40 = arith.constant 0 : index
      %c0_41 = arith.constant 0 : index
      %c0_42 = arith.constant 0 : index
      %50 = vector.load %arg11[%c0_40, %c0_41, %c0_42] : memref<1x8x128xf32, #tpu.memory_space<vmem>>, vector<1x8x128xf32>
      tpu.vector_store %arg11[%c0_40, %c0_41, %c0_42], %49 {strides = array<i32>} : memref<1x8x128xf32, #tpu.memory_space<vmem>>, vector<1x8x128xf32>,
    } else {
    }
    %c0 = arith.constant 0 : index
    %c0_1 = arith.constant 0 : index
    %3 = vector.load %arg8[%c0, %c0_1] : memref<8x32xf32, #tpu.memory_space<vmem>>, vector<8x32xf32>
    %c0_2 = arith.constant 0 : index
    %c0_3 = arith.constant 0 : index
    %4 = vector.load %arg9[%c0_2, %c0_3] : memref<8x32xf32, #tpu.memory_space<vmem>>, vector<8x32xf32>
    %cst = arith.constant dense<0.000000e+00> : vector<8x8xf32>
    %5 = tpu.matmul %3, %4, %cst {dimension_numbers = #tpu.dot_dimension_numbers<[1], [1], [0], [0], [0, 0, 1, 0], [], []>} : vector<8x32xf32>, vector<8x32xf32>, vector<8x8xf32> -> vector<8x8xf32>
    %c0_4 = arith.constant 0 : index
    %c0_5 = arith.constant 0 : index
    %6 = vector.load %arg2[%c0_4, %c0_5] : memref<8x1xf32, #tpu.memory_space<vmem>>, vector<8x1xf32>
    %c0_6 = arith.constant 0 : index
    %c0_7 = arith.constant 0 : index
    %7 = vector.load %arg3[%c0_6, %c0_7] : memref<1x8xf32, #tpu.memory_space<vmem>>, vector<1x8xf32>
    %8 = vector.broadcast %6 : vector<8x1xf32> to vector<8x8xf32>
    %9 = vector.broadcast %7 : vector<1x8xf32> to vector<8x8xf32>
    %10 = arith.addf %8, %9 : vector<8x8xf32>
    %cst_8 = arith.constant 2.000000e+00 : f32
    %11 = vector.broadcast %cst_8 : f32 to vector<8x8xf32>
    %12 = arith.mulf %11, %5 : vector<8x8xf32>
    %13 = arith.subf %10, %12 : vector<8x8xf32>
    %c0_9 = arith.constant 0 : index
    %c0_10 = arith.constant 0 : index
    %14 = vector.load %arg4[%c0_9, %c0_10] : memref<8x1xi32, #tpu.memory_space<vmem>>, vector<8x1xi32>
    %c0_11 = arith.constant 0 : index
    %c0_12 = arith.constant 0 : index
    %15 = vector.load %arg5[%c0_11, %c0_12] : memref<1x8xi32, #tpu.memory_space<vmem>>, vector<1x8xi32>
    %16 = vector.broadcast %14 : vector<8x1xi32> to vector<8x8xi32>
    %17 = vector.broadcast %15 : vector<1x8xi32> to vector<8x8xi32>
    %18 = arith.cmpi eq, %16, %17 : vector<8x8xi32>
    %c0_13 = arith.constant 0 : index
    %c0_14 = arith.constant 0 : index
    %19 = vector.load %arg6[%c0_13, %c0_14] : memref<8x1xi32, #tpu.memory_space<vmem>>, vector<8x1xi32>
    %c0_15 = arith.constant 0 : index
    %c0_16 = arith.constant 0 : index
    %20 = vector.load %arg7[%c0_15, %c0_16] : memref<1x8xi32, #tpu.memory_space<vmem>>, vector<1x8xi32>
    %21 = vector.broadcast %19 : vector<8x1xi32> to vector<8x8xi32>
    %22 = vector.broadcast %20 : vector<1x8xi32> to vector<8x8xi32>
    %23 = arith.cmpi eq, %21, %22 : vector<8x8xi32>
    %cst_17 = arith.constant dense<true> : vector<8x8xi1>
    %24 = arith.xori %23, %cst_17 : vector<8x8xi1>
    %25 = arith.andi %18, %24 : vector<8x8xi1>
    %cst_18 = arith.constant dense<true> : vector<8x8xi1>
    %26 = arith.xori %18, %cst_18 : vector<8x8xi1>
    %cst_19 = arith.constant 0xFF800000 : f32
    %27 = vector.broadcast %cst_19 : f32 to vector<8x8xf32>
    %28 = arith.select %25, %13, %27 : vector<8x8xi1>, vector<8x8xf32>
    %29 = vector.shape_cast %28 : vector<8x8xf32> to vector<1x8x8xf32>
    %cst_20 = arith.constant dense<0xFF800000> : vector<1xf32>
    %30 = vector.multi_reduction <maximumf>, %29, %cst_20 [1, 2] : vector<1x8x8xf32> to vector<1xf32>
    %31 = vector.shape_cast %30 : vector<1xf32> to vector<1x1x1xf32>
    %32 = vector.extract %31[0, 0, 0] : f32 from vector<1x1x1xf32>
    %cst_21 = arith.constant 0x7F800000 : f32
    %33 = vector.broadcast %cst_21 : f32 to vector<8x8xf32>
    %34 = arith.select %26, %13, %33 : vector<8x8xi1>, vector<8x8xf32>
    %35 = vector.shape_cast %34 : vector<8x8xf32> to vector<1x8x8xf32>
    %cst_22 = arith.constant dense<0x7F800000> : vector<1xf32>
    %36 = vector.multi_reduction <minimumf>, %35, %cst_22 [1, 2] : vector<1x8x8xf32> to vector<1xf32>
    %37 = vector.shape_cast %36 : vector<1xf32> to vector<1x1x1xf32>
    %38 = vector.extract %37[0, 0, 0] : f32 from vector<1x1x1xf32>
    %c0_23 = arith.constant 0 : index
    %c0_24 = arith.constant 0 : index
    %c0_25 = arith.constant 0 : index
    %39 = vector.load %arg10[%c0_23, %c0_24, %c0_25] : memref<1x8x128xf32, #tpu.memory_space<vmem>>, vector<1x8x128xf32>
    %40 = vector.broadcast %32 : f32 to vector<1x8x128xf32>
    %41 = arith.maximumf %39, %40 : vector<1x8x128xf32>
    %c0_26 = arith.constant 0 : index
    %c0_27 = arith.constant 0 : index
    %c0_28 = arith.constant 0 : index
    %42 = vector.load %arg10[%c0_26, %c0_27, %c0_28] : memref<1x8x128xf32, #tpu.memory_space<vmem>>, vector<1x8x128xf32>
    tpu.vector_store %arg10[%c0_26, %c0_27, %c0_28], %41 {strides = array<i32>} : memref<1x8x128xf32, #tpu.memory_space<vmem>>, vector<1x8x128xf32>,
    %c0_29 = arith.constant 0 : index
    %c0_30 = arith.constant 0 : index
    %c0_31 = arith.constant 0 : index
    %43 = vector.load %arg11[%c0_29, %c0_30, %c0_31] : memref<1x8x128xf32, #tpu.memory_space<vmem>>, vector<1x8x128xf32>
    %44 = vector.broadcast %38 : f32 to vector<1x8x128xf32>
    %45 = arith.minimumf %43, %44 : vector<1x8x128xf32>
    %c0_32 = arith.constant 0 : index
    %c0_33 = arith.constant 0 : index
    %c0_34 = arith.constant 0 : index
    %46 = vector.load %arg11[%c0_32, %c0_33, %c0_34] : memref<1x8x128xf32, #tpu.memory_space<vmem>>, vector<1x8x128xf32>
    tpu.vector_store %arg11[%c0_32, %c0_33, %c0_34], %45 {strides = array<i32>} : memref<1x8x128xf32, #tpu.memory_space<vmem>>, vector<1x8x128xf32>,
    return
  }
  func.func @transform_0(%arg0: i32, %arg1: i32) -> (i32, i32) {
    %c0_i32 = arith.constant 0 : i32
    %c0_i32_0 = arith.constant 0 : i32
    return %arg0, %c0_i32 : i32, i32
  }
  func.func @transform_1(%arg0: i32, %arg1: i32) -> (i32, i32) {
    %c0_i32 = arith.constant 0 : i32
    %c0_i32_0 = arith.constant 0 : i32
    return %c0_i32, %arg1 : i32, i32
  }
  func.func @transform_2(%arg0: i32, %arg1: i32) -> (i32, i32) {
    %c0_i32 = arith.constant 0 : i32
    %c0_i32_0 = arith.constant 0 : i32
    return %arg0, %c0_i32 : i32, i32
  }
  func.func @transform_3(%arg0: i32, %arg1: i32) -> (i32, i32) {
    %c0_i32 = arith.constant 0 : i32
    %c0_i32_0 = arith.constant 0 : i32
    return %c0_i32, %arg1 : i32, i32
  }
  func.func @transform_4(%arg0: i32, %arg1: i32) -> (i32, i32) {
    %c0_i32 = arith.constant 0 : i32
    %c0_i32_0 = arith.constant 0 : i32
    return %arg0, %c0_i32 : i32, i32
  }
  func.func @transform_5(%arg0: i32, %arg1: i32) -> (i32, i32) {
    %c0_i32 = arith.constant 0 : i32
    %c0_i32_0 = arith.constant 0 : i32
    return %c0_i32, %arg1 : i32, i32
  }
  func.func @transform_6(%arg0: i32, %arg1: i32) -> (i32, i32) {
    %c0_i32 = arith.constant 0 : i32
    %c0_i32_0 = arith.constant 0 : i32
    return %arg0, %c0_i32 : i32, i32
  }
  func.func @transform_7(%arg0: i32, %arg1: i32) -> (i32, i32) {
    %c0_i32 = arith.constant 0 : i32
    %c0_i32_0 = arith.constant 0 : i32
    return %arg1, %c0_i32 : i32, i32
  }
  func.func @transform_8(%arg0: i32, %arg1: i32) -> (i32, i32, i32) {
    %c0_i32 = arith.constant 0 : i32
    %c0_i32_0 = arith.constant 0 : i32
    %c0_i32_1 = arith.constant 0 : i32
    return %arg0, %c0_i32, %c0_i32_0 : i32, i32, i32
  }
  func.func @transform_9(%arg0: i32, %arg1: i32) -> (i32, i32, i32) {
    %c0_i32 = arith.constant 0 : i32
    %c0_i32_0 = arith.constant 0 : i32
    %c0_i32_1 = arith.constant 0 : i32
    return %arg0, %c0_i32, %c0_i32_0 : i32, i32, i32
  }
}

</mosaic_0001>

<bundles_post_ra>
// kernel: tpu_custom_call.1
= control target key start
LH: loop header
LB: loop body
LE: loop exit
PB: predicated region body
PF: predicated region fallthrough
CT: control target
= control target key end

     0   :  { %15 = vsyncpa [#allocation3], 0  ;;  %vm41_vm0 = vcmask 261120   ;;  %v286_v1 = vmov 0.0   ;;  %vm287_vm1 = vmmov 0   ;;  %v288_v5 = vmov 0   ;;  %s374_s0 = inlined_call_operand.vmem [shape: f32[8,1], index: 0, kind: input, shape index: {}]   ;;  %s375_s1 = inlined_call_operand.vmem [shape: f32[1,8], index: 1, kind: input, shape index: {}]   ;;  %s376_s2 = inlined_call_operand.vmem [shape: s32[8,1], index: 2, kind: input, shape index: {}]   ;;  %s377_s3 = inlined_call_operand.vmem [shape: s32[1,8], index: 3, kind: input, shape index: {}]   ;;  %s378_s4 = inlined_call_operand.vmem [shape: s32[8,1], index: 4, kind: input, shape index: {}]   ;;  %s379_s5 = inlined_call_operand.vmem [shape: s32[1,8], index: 5, kind: input, shape index: {}]   ;;  %s380_s6 = inlined_call_operand.vmem [shape: f32[8,32], index: 6, kind: input, shape index: {}]   ;;  %s381_s7 = inlined_call_operand.vmem [shape: f32[8,32], index: 7, kind: input, shape index: {}]   ;;  %s382_s8 = inlined_call_operand.hbm [shape: f32[1,8,128], index: 8, kind: output, shape index: {0}]   ;;  %s383_s9 = inlined_call_operand.hbm [shape: f32[1,8,128], index: 9, kind: output, shape index: {1}]  }
   0x1   :  { %v40_v0 = vld [vmem:[%s381_s7] sm:$0xff]  ;;  %223 = vmatprep.subr.mxu0 %v286_v1  ;;  %225 = vmatprep.mubr.msk.f32.mxu0 %vm287_vm1, %v286_v1 }
   0x2   :  { %v118_v2 = vld [vmem:[%s374_s0] sm:$0xff]  ;;  %224 = vmatpush3.xpose.msk.msra.mxu0 %vm41_vm0, %v40_v0  ;;  %240 = vset.pattern.permute.xlu0 %v288_v5 }
   0x3   :  { %v134_v3 = vld [vmem:[%s376_s2] sm:$0xff] }
   0x4   :  { %v39_v4 = vld [vmem:[%s380_s6] sm:$0xff] }
   0x5   :  { %16 = vsyncpa [#allocation5], 0  ;;  %122 = vperm.xlu0 %240, %v118_v2   ;;  %241 = vset.pattern.permute.xlu1 %v288_v5  ;;  %v144_v6 = vld [vmem:[%s378_s4] sm:$0xff]  ;;  %vm289_vm3 = vmmov 1   ;;  %vm158_vm7 = vcmask 64512  }
   0x6   :  { %137 = vperm.xlu1 %241, %v134_v3   ;;  %226 = vmatmul.mubr.msk.f32.vlgmr.msra.gmra.mxu0 %vm41_vm0, %v39_v4  ;;  %v220_v8 = vld [vmem:[%s379_s5] ss:$0 sm:$0xff]  ;;  %s291_s5 = smov [#allocation4]  }
   0x7   :  { %v218_v10 = vld [vmem:[%s375_s1] ss:$0 sm:$0xff]  ;;  %s290_s1 = smov [#allocation2]   ;;  %s204_s21 = sshll.u32 %s291_s5, 4  ;;  %s205_s21 = int_to_ptr.vmem [resolvable:$true] %s204_s21 }
   0x8   :  { %v219_v11 = vld [vmem:[%s377_s3] ss:$0 sm:$0xff]  ;;  %s194_s3 = sshll.u32 %s290_s1, 4  ;;  %s195_s3 = int_to_ptr.vmem [resolvable:$true] %s194_s3 }
   0x9   :  { %147 = vperm.xlu0 %240, %v144_v6   ;;  %s242_s23 = scalar_lea.vmem %s195_s3, 128  ;;  %p247_p1 = scmp.lt.s32.totalorder %s195_s3, %s195_s3 }
   0xa   :  { %p243_p0 = scmp.ne.s32.totalorder %s195_s3, %s242_s23  ;;  %p248_p2 = scmp.lt.s32.totalorder %s242_s23, %s242_s23 }
   0xc   :  { %p249_p3 = por %p248_p2, %p247_p1 }
   0xe   :  { %p250_p4 = pnand %p249_p3, %p243_p0 }
  0x80   :  { %v123_v7 = vpop.permute.xlu0 %122 }
  0x81   :  { %v138_v12 = vpop.permute.xlu1 %137  ;;  %v131_v14 = vadd.f32 %v218_v10, %v123_v7 }
  0x82   :  { %vm143_vm5 = vcmp.eq.s32.totalorder %v138_v12, %v219_v11 }
  0x83   :  { %vm156_vm6 = vmxor %vm143_vm5, %vm289_vm3 }
  0x84   :  { %v148_v9 = vpop.permute.xlu0 %147 }
  0x85   :  { %vm153_vm2 = vcmp.eq.s32.totalorder %v148_v9, %v220_v8 }
  0x86   :  { %vm154_vm4 = vmxor %vm153_vm2, %vm289_vm3 }
  0x87   :  { %vm155_vm8 = vmand %vm143_vm5, %vm154_vm4 }
  0xc6   :  { %v114_v13 = vpop.f32.mrf.mxu0 }
  0xc7   :  { %v132_v15 = vmul.f32 2.0, %v114_v13 }
  0xc8   :  { %v227_v16 = vpop.f32.mrf.mxu0 }
  0xc9   :  { %v133_v17 = vsub.f32 %v131_v14, %v132_v15 }
  0xcb   :  { %v169_v18 = vsel %vm156_vm6, %v133_v17, inf  ;;  %v157_v19 = vsel %vm155_vm8, %v133_v17, -inf }
  0xcc   :  { %v170_v20 = vsel %vm158_vm7, %v169_v18, inf  ;;  %v159_v21 = vsel %vm158_vm7, %v157_v19, -inf }
  0xcd   :  { %171 = vmin.xlane.f32.xlu0 %v170_v20  ;;  %160 = vmax.xlane.f32.xlu1 %v159_v21 }
 0x156   :  { %v172_v22 = vpop.xlane.xlu0 %171  ;;  %v161_v23 = vpop.xlane.xlu1 %160 }
 0x157   :  { %v173_v24 = vrot.slane %v172_v22, 4  ;;  %v162_v25 = vrot.slane %v161_v23, 4 }
 0x159   :  { %v174_v26 = vmin.f32 %v172_v22, %v173_v24  ;;  %v163_v27 = vmax.f32 %v161_v23, %v162_v25 }
 0x15b   :  { %v175_v28 = vrot.slane %v174_v26, 2  ;;  %v164_v29 = vrot.slane %v163_v27, 2 }
 0x15d   :  { %v176_v30 = vmin.f32 %v174_v26, %v175_v28  ;;  %v165_v31 = vmax.f32 %v163_v27, %v164_v29 }
 0x15f   :  { %v166_v32 = vrot.slane %v165_v31, 1  ;;  %v177_v33 = vrot.slane %v176_v30, 1 }
 0x161   :  { %v167_v34 = vmax.f32 %v165_v31, %v166_v32  ;;  %v178_v35 = vmin.f32 %v176_v30, %v177_v33 }
 0x163   :  { %228 = vpush %v167_v34 }
 0x164   :  { %230 = vpush %v178_v35 }
 0x194   :  { %s229_s4 = spop %228 }
 0x195   :  { %v181_v36 = vstv %s229_s4  ;;  %s231_s22 = spop %230 }
 0x196   :  { %v185_v37 = vstv %s231_s22  ;;  %183 = vst [vmem:[#allocation2] sm:$0xff] %v181_v36 }
 0x197   :  { %187 = vst [vmem:[#allocation4] sm:$0xff] %v185_v37 }
 0x198   :  { %253 = shalt.err (!%p250_p4)
}
 0x199   :  { %197 = dma.vmem_to_hbm [thread:$0]  %s195_s3, 128, %s382_s8, [#allocation3]  }
 0x19a   :  { %s262_s26 = scalar_lea.vmem %s205_s21, 128  ;;  %p267_p6 = scmp.lt.s32.totalorder %s205_s21, %s205_s21 }
 0x19b   :  { %p263_p5 = scmp.ne.s32.totalorder %s205_s21, %s262_s26  ;;  %p268_p7 = scmp.lt.s32.totalorder %s262_s26, %s262_s26 }
 0x19d   :  { %p269_p8 = por %p268_p7, %p267_p6 }
 0x19f   :  { %p270_p9 = pnand %p269_p8, %p263_p5 }
 0x1a1   :  { %273 = shalt.err (!%p270_p9)
}
 0x1a2   :  { %207 = dma.vmem_to_hbm [thread:$0]  %s205_s21, 128, %s383_s9, [#allocation5]  }
 0x1a3   :  { %282 = dma.done.wait [#allocation3], 128  }
 0x1a4   :  { %283 = vsyncadd [#allocation3], 4294967168 }
 0x1a5   :  { %284 = dma.done.wait [#allocation5], 128  }
 0x1a6   :  { %285 = vsyncadd [#allocation5], 4294967168 }
 0x1a7   :  { %214 = vsyncpa [#allocation3], 1 }
 0x1a8   :  { %215 = vsyncpa [#allocation5], 1 }

</bundles_post_ra>
